<compile_context>
chip_gen: v5e
topology: v5e:2x2
jax: 0.10.0
libtpu: 0.0.40
codegen_flags: <defaults>
</compile_context>

<pallas_src>
import functools

import jax
import jax.numpy as jnp
from jax.experimental import pallas as pl
from jax.experimental.pallas import tpu as pltpu


def _vq_kernel(z_ref, neg2e_ref, et_ref, esq_ref,
               zq_ref, idx_ref, hist_ref, sse_ref,
               *, use_mxu_cross, hw_valid):
    """One (batch, spatial) tile of vector quantization, channel-major.

    z_ref    : (1, e_dim, tm) f32        latents (channel-major)
    neg2e_ref: (n_e, e_dim)   f32/bf16   -2 * codebook          (hoisted const)
    et_ref   : (e_dim, n_e)   f32        codebook transposed    (hoisted const)
    esq_ref  : (n_e, 1)       f32        ||codebook||^2         (hoisted const)
    zq_ref   : (1, e_dim, tm) f32        quantized latents      (lane-dense out)
    idx_ref  : (1, 1, tm)     i32        argmin code index      (lane-dense out)
    hist_ref : (1, n_e, 1)    f32        per-tile code counts   (fused partial)
    sse_ref  : (1, 1, 1)      f32        per-tile sum((z_q-z)^2)(fused partial)
    """
    zt = z_ref[0]                       # (e_dim, tm) f32
    et = et_ref[...]                    # (e_dim, n_e) f32
    e_sq = esq_ref[...]                 # (n_e, 1) f32
    n_e = e_sq.shape[0]
    e_dim, tm = zt.shape

    # Distance up to the per-column constant ||z||^2 (does not affect the
    # argmin over codes):  d = ||e||^2 - 2 e.z
    if use_mxu_cross:
        # bf16 MXU cross term, f32 accumulate (neg2e pre-cast in the wrapper).
        cross = jnp.dot(neg2e_ref[...], zt.astype(jnp.bfloat16),
                        preferred_element_type=jnp.float32)        # (n_e, tm)
        d = e_sq + cross
    else:
        # Tiny contraction (e_dim <= 8): skip the MXU, unrolled VPU FMAs.
        neg2e = neg2e_ref[...]          # (n_e, e_dim) f32
        d = e_sq
        for k in range(e_dim):          # static unroll, e_dim is small
            d = d + neg2e[:, k:k + 1] * zt[k:k + 1, :]             # (n_e, tm)

    # argmin over codes (sublane axis), first-index tie-break (== torch.argmin),
    # done entirely in int32 (no float<->int casts).
    min_d = jnp.min(d, axis=0, keepdims=True)                      # (1, tm)
    code_i = jax.lax.broadcasted_iota(jnp.int32, d.shape, 0)       # (n_e, tm)
    idx_i = jnp.min(jnp.where(d == min_d, code_i, n_e),
                    axis=0, keepdims=True)                         # (1, tm) i32

    one_hot_t = (code_i == idx_i).astype(jnp.float32)              # (n_e, tm)

    if hw_valid is not None:  # static: only when the spatial dim was padded
        col = (pl.program_id(1) * tm
               + jax.lax.broadcasted_iota(jnp.int32, (1, tm), 1))  # (1, tm)
        one_hot_t = jnp.where(col < hw_valid, one_hot_t, 0.0)

    # z_q^T = E^T @ one_hot^T  (f32 MXU), lane-dense (e_dim, tm) store.
    zq_t = jnp.dot(et, one_hot_t, preferred_element_type=jnp.float32)
    zq_ref[0] = zq_t
    idx_ref[0] = idx_i

    # Fused partial reductions:
    #  * histogram as a matmul on the MXU (has slack) instead of an XLU
    #    cross-lane reduce feeding a lane-width-1 store,
    #  * SSE reduces over sublanes (e_dim) first, single cross-lane pass last.
    hist_ref[0] = jnp.dot(one_hot_t, jnp.ones((tm, 1), jnp.float32),
                          preferred_element_type=jnp.float32)      # (n_e, 1)
    diff = zq_t - zt
    sse_ref[0] = jnp.sum(jnp.sum(diff * diff, axis=0, keepdims=True),
                         axis=1, keepdims=True)                    # (1, 1)


def _vmem_budget_bytes():
    """Generation-aware scoped-VMEM limit (~3/4 of physical VMEM)."""
    try:
        phys = int(pltpu.get_tpu_info().vmem_capacity_bytes)
    except Exception:
        phys = 64 << 20   # conservative default (v7x per-core VMEM)
    return max(32 << 20, (phys * 3) // 4)   # 48 MiB on v7x, 96 MiB on v5e/v6e


def _pick_row_tile(hw_pad, n_e, e_dim, vmem_budget):
    """Largest 128-multiple tile whose estimated footprint fits the budget.

    The estimate includes the double-buffered z/z_q blocks AND the (n_e, tm)
    in-kernel intermediates (d, one-hot, iota), plus single copies of the
    codebook constants.  No ">=2 grid steps" shrinking: that only ever helped
    v7x megacore and just added per-step overhead on v5e/v6e.
    """
    usable = int(vmem_budget * 0.6)        # headroom for compiler temps
    best = 128
    for tm in (128, 256, 512, 1024, 2048):
        if hw_pad % tm != 0:
            continue
        est = 4 * (2 * 2 * e_dim * tm      # z in + z_q out, double-buffered
                   + 4 * n_e * tm          # d, one-hot, iota, one spare
                   + 2 * n_e * e_dim       # codebook constants (-2E, E^T)
                   + 2 * tm + n_e)         # idx rows, ||E||^2, small extras
        if est <= usable:
            best = tm
    return best


def _vq_pallas(z_bcs, neg2e, et, e_sq, *, tm, hw_valid, use_mxu_cross,
               vmem_limit):
    B, e_dim, HWp = z_bcs.shape
    n_e = et.shape[1]
    assert HWp % tm == 0
    T = HWp // tm                 # spatial tiles per batch element
    G = B * T                     # total grid steps

    kernel = functools.partial(_vq_kernel, use_mxu_cross=use_mxu_cross,
                               hw_valid=hw_valid)

    out_shape = (
        jax.ShapeDtypeStruct((B, e_dim, HWp), jnp.float32),   # z_q (chan-major)
        jax.ShapeDtypeStruct((G, 1, tm), jnp.int32),          # indices
        jax.ShapeDtypeStruct((G, n_e, 1), jnp.float32),       # per-tile hist
        jax.ShapeDtypeStruct((G, 1, 1), jnp.float32),         # per-tile SSE
    )

    grid_spec = pltpu.PrefetchScalarGridSpec(
        num_scalar_prefetch=0,
        grid=(B, T),
        in_specs=[
            pl.BlockSpec((1, e_dim, tm), lambda b, t: (b, 0, t)),
            pl.BlockSpec((n_e, e_dim), lambda b, t: (0, 0)),
            pl.BlockSpec((e_dim, n_e), lambda b, t: (0, 0)),
            pl.BlockSpec((n_e, 1), lambda b, t: (0, 0)),
        ],
        out_specs=[
            pl.BlockSpec((1, e_dim, tm), lambda b, t: (b, 0, t)),
            pl.BlockSpec((1, 1, tm), lambda b, t: (b * T + t, 0, 0)),
            pl.BlockSpec((1, n_e, 1), lambda b, t: (b * T + t, 0, 0)),
            pl.BlockSpec((1, 1, 1), lambda b, t: (b * T + t, 0, 0)),
        ],
    )

    return pl.pallas_call(
        kernel,
        out_shape=out_shape,
        grid_spec=grid_spec,
        compiler_params=pltpu.CompilerParams(
            dimension_semantics=("parallel", "parallel"),
            vmem_limit_bytes=int(vmem_limit),
        ),
    )(z_bcs, neg2e, et, e_sq)


def vector_quantizer_forward(z_nchw, embedding, beta):
    """Replicates VectorQuantizer.forward (forward values only).

    z_nchw    : (B, e_dim, H, W) float32
    embedding : (n_e, e_dim)     float32 codebook
    Returns (loss, z_q [NCHW], perplexity, min_encodings, min_encoding_indices).
    """
    B, C, H, W = z_nchw.shape
    n_e, e_dim = embedding.shape
    assert C == e_dim
    HW = H * W
    N = B * HW

    pad = (-HW) % 128
    HWp = HW + pad
    hw_valid = HW if pad else None

    vmem_limit = _vmem_budget_bytes()
    tm = _pick_row_tile(HWp, n_e, e_dim, vmem_limit)

    # Tiny contractions badly underfill the MXU: use the VPU FMA path instead.
    use_mxu_cross = e_dim > 8

    # Hoisted codebook-derived constants (computed once per call, tiny).
    neg2e = (-2.0) * embedding                                    # (n_e, e_dim)
    if use_mxu_cross:
        neg2e = neg2e.astype(jnp.bfloat16)    # bf16 MXU cross term, f32 accum
    et = jnp.transpose(embedding)                                 # (e_dim, n_e)
    e_sq = jnp.sum(embedding * embedding, axis=1, keepdims=True)  # (n_e, 1)

    # Channel-major view: a free reshape, no NCHW->NHWC transpose HBM pass.
    z_bcs = z_nchw.reshape(B, C, HW)
    if pad:
        z_bcs = jnp.pad(z_bcs, ((0, 0), (0, 0), (0, pad)))

    zq_bcs, idx_tiles, hist_tiles, sse_tiles = _vq_pallas(
        z_bcs, neg2e, et, e_sq, tm=tm, hw_valid=hw_valid,
        use_mxu_cross=use_mxu_cross, vmem_limit=vmem_limit)

    if pad:
        zq_bcs = zq_bcs[:, :, :HW]
    z_q = zq_bcs.reshape(B, C, H, W)

    # loss = mean((sg(z_q)-z)^2) + beta*mean((z_q-sg(z))^2)  (forward value),
    # reduced from the fused per-tile partial sums (padded columns contribute 0).
    loss = (1.0 + beta) * jnp.sum(sse_tiles) / (N * e_dim)

    # perplexity from the fused per-tile histograms (padded columns masked out).
    e_mean = jnp.sum(hist_tiles, axis=0)[:, 0] / N
    perplexity = jnp.exp(-jnp.sum(e_mean * jnp.log(e_mean + 1e-10)))

    # rows ordered exactly like torch's permute(0,2,3,1).view(-1, e_dim)
    idx_flat = idx_tiles.reshape(B, HWp)
    if pad:
        idx_flat = idx_flat[:, :HW]
    min_encoding_indices = idx_flat.reshape(N, 1)   # int32 (torch uses int64)

    # min_encodings reconstructed from idx in the wrapper (identical one-hot
    # values); the kernel never writes the dominant N x n_e f32 slab.
    min_encodings = jax.nn.one_hot(idx_flat.reshape(N), n_e, dtype=jnp.float32)

    # TODO(synk): straight-through gradient routing (stop_gradient split of the
    # two loss terms and z_q = z + sg(z_q - z)) is not modeled; forward only.
    return loss, z_q, perplexity, min_encodings, min_encoding_indices


def _reference_forward(z_nchw, embedding, beta):
    """Pure-JAX reference for a correctness check."""
    e_dim = embedding.shape[1]
    z = jnp.transpose(z_nchw, (0, 2, 3, 1))
    zf = z.reshape(-1, e_dim)
    d = (jnp.sum(zf ** 2, axis=1, keepdims=True)
         + jnp.sum(embedding ** 2, axis=1)
         - 2.0 * zf @ embedding.T)
    idx = jnp.argmin(d, axis=1)
    enc = jax.nn.one_hot(idx, embedding.shape[0], dtype=jnp.float32)
    zq = (enc @ embedding).reshape(z.shape)
    loss = (1.0 + beta) * jnp.mean((zq - z) ** 2)
    e_mean = jnp.mean(enc, axis=0)
    perp = jnp.exp(-jnp.sum(e_mean * jnp.log(e_mean + 1e-10)))
    return loss, jnp.transpose(zq, (0, 3, 1, 2)), perp, enc, idx[:, None]


if __name__ == "__main__":
    # Module hyper-params (small, consistent with the forward pass).
    n_e, e_dim, beta = 16, 4, 0.25
    B, H, W = 2, 16, 16                       # N = B*H*W = 512

    key = jax.random.PRNGKey(0)
    k_emb, k_z = jax.random.split(key)

    # embedding.weight.data.uniform_(-1/n_e, 1/n_e), deterministic
    embedding = jax.random.uniform(
        k_emb, (n_e, e_dim), dtype=jnp.float32,
        minval=-1.0 / n_e, maxval=1.0 / n_e)

    # input z in NCHW, channels == e_dim
    x = jax.random.normal(k_z, (B, e_dim, H, W), dtype=jnp.float32)

    fwd = jax.jit(functools.partial(vector_quantizer_forward, beta=beta))
    loss, z_q, perplexity, min_encodings, min_encoding_indices = fwd(x, embedding)
    jax.block_until_ready((loss, z_q, perplexity, min_encodings,
                           min_encoding_indices))

    # sanity check vs. pure-JAX reference
    ref = _reference_forward(x, embedding, beta)
    assert jnp.allclose(loss, ref[0], atol=1e-5)
    assert jnp.allclose(z_q, ref[1], atol=1e-5)
    assert jnp.allclose(perplexity, ref[2], atol=1e-4)
    assert jnp.array_equal(min_encodings, ref[3])
    assert jnp.array_equal(min_encoding_indices.astype(jnp.int32),
                           ref[4].astype(jnp.int32))

    print("KERNEL_OK")
</pallas_src>

<mosaic_0001>
module attributes {stable_mosaic.version = 11 : i64} {
  func.func @_vq_kernel(%arg0: i32, %arg1: i32, %arg2: memref<1x4x256xf32, #tpu.memory_space<vmem>>, %arg3: memref<16x4xf32, #tpu.memory_space<vmem>>, %arg4: memref<4x16xf32, #tpu.memory_space<vmem>>, %arg5: memref<16x1xf32, #tpu.memory_space<vmem>>, %arg6: memref<1x4x256xf32, #tpu.memory_space<vmem>>, %arg7: memref<1x1x256xi32, #tpu.memory_space<vmem>>, %arg8: memref<1x16x1xf32, #tpu.memory_space<vmem>>, %arg9: memref<1x1x1xf32, #tpu.memory_space<vmem>>) attributes {dimension_semantics = [#tpu.dimension_semantics<parallel>, #tpu.dimension_semantics<parallel>], iteration_bounds = array<i64: 2, 1>, scalar_prefetch = 0 : i64, scratch_operands = 0 : i64, tpu.core_type = #tpu.core_type<tc>, window_params = [{transform_indices = @transform_0, window_bounds = array<i64: 1, 4, 256>}, {pipeline_mode = #tpu.pipeline_mode<synchronous>, transform_indices = @transform_1, window_bounds = array<i64: 16, 4>}, {pipeline_mode = #tpu.pipeline_mode<synchronous>, transform_indices = @transform_2, window_bounds = array<i64: 4, 16>}, {pipeline_mode = #tpu.pipeline_mode<synchronous>, transform_indices = @transform_3, window_bounds = array<i64: 16, 1>}, {transform_indices = @transform_4, window_bounds = array<i64: 1, 4, 256>}, {transform_indices = @transform_5, window_bounds = array<i64: 1, 1, 256>}, {transform_indices = @transform_6, window_bounds = array<i64: 1, 16, 1>}, {transform_indices = @transform_7, window_bounds = array<i64: 1, 1, 1>}]} {
    %c0 = arith.constant 0 : index
    %c0_0 = arith.constant 0 : index
    %c0_1 = arith.constant 0 : index
    %0 = vector.load %arg2[%c0, %c0_0, %c0_1] : memref<1x4x256xf32, #tpu.memory_space<vmem>>, vector<1x4x256xf32>
    %1 = vector.shape_cast %0 : vector<1x4x256xf32> to vector<4x256xf32>
    %c0_2 = arith.constant 0 : index
    %c0_3 = arith.constant 0 : index
    %2 = vector.load %arg4[%c0_2, %c0_3] : memref<4x16xf32, #tpu.memory_space<vmem>>, vector<4x16xf32>
    %c0_4 = arith.constant 0 : index
    %c0_5 = arith.constant 0 : index
    %3 = vector.load %arg5[%c0_4, %c0_5] : memref<16x1xf32, #tpu.memory_space<vmem>>, vector<16x1xf32>
    %c0_6 = arith.constant 0 : index
    %c0_7 = arith.constant 0 : index
    %4 = vector.load %arg3[%c0_6, %c0_7] : memref<16x4xf32, #tpu.memory_space<vmem>>, vector<16x4xf32>
    %5 = vector.extract_strided_slice %4 {offsets = [0, 0], sizes = [16, 1], strides = [1, 1]} : vector<16x4xf32> to vector<16x1xf32>
    %6 = vector.extract_strided_slice %1 {offsets = [0, 0], sizes = [1, 256], strides = [1, 1]} : vector<4x256xf32> to vector<1x256xf32>
    %7 = vector.broadcast %5 : vector<16x1xf32> to vector<16x256xf32>
    %8 = vector.broadcast %6 : vector<1x256xf32> to vector<16x256xf32>
    %9 = arith.mulf %7, %8 : vector<16x256xf32>
    %10 = vector.broadcast %3 : vector<16x1xf32> to vector<16x256xf32>
    %11 = arith.addf %10, %9 : vector<16x256xf32>
    %12 = vector.extract_strided_slice %4 {offsets = [0, 1], sizes = [16, 1], strides = [1, 1]} : vector<16x4xf32> to vector<16x1xf32>
    %13 = vector.extract_strided_slice %1 {offsets = [1, 0], sizes = [1, 256], strides = [1, 1]} : vector<4x256xf32> to vector<1x256xf32>
    %14 = vector.broadcast %12 : vector<16x1xf32> to vector<16x256xf32>
    %15 = vector.broadcast %13 : vector<1x256xf32> to vector<16x256xf32>
    %16 = arith.mulf %14, %15 : vector<16x256xf32>
    %17 = arith.addf %11, %16 : vector<16x256xf32>
    %18 = vector.extract_strided_slice %4 {offsets = [0, 2], sizes = [16, 1], strides = [1, 1]} : vector<16x4xf32> to vector<16x1xf32>
    %19 = vector.extract_strided_slice %1 {offsets = [2, 0], sizes = [1, 256], strides = [1, 1]} : vector<4x256xf32> to vector<1x256xf32>
    %20 = vector.broadcast %18 : vector<16x1xf32> to vector<16x256xf32>
    %21 = vector.broadcast %19 : vector<1x256xf32> to vector<16x256xf32>
    %22 = arith.mulf %20, %21 : vector<16x256xf32>
    %23 = arith.addf %17, %22 : vector<16x256xf32>
    %24 = vector.extract_strided_slice %4 {offsets = [0, 3], sizes = [16, 1], strides = [1, 1]} : vector<16x4xf32> to vector<16x1xf32>
    %25 = vector.extract_strided_slice %1 {offsets = [3, 0], sizes = [1, 256], strides = [1, 1]} : vector<4x256xf32> to vector<1x256xf32>
    %26 = vector.broadcast %24 : vector<16x1xf32> to vector<16x256xf32>
    %27 = vector.broadcast %25 : vector<1x256xf32> to vector<16x256xf32>
    %28 = arith.mulf %26, %27 : vector<16x256xf32>
    %29 = arith.addf %23, %28 : vector<16x256xf32>
    %cst = arith.constant dense<0x7F800000> : vector<256xf32>
    %30 = vector.multi_reduction <minimumf>, %29, %cst [0] : vector<16x256xf32> to vector<256xf32>
    %31 = vector.shape_cast %30 : vector<256xf32> to vector<1x256xf32>
    %32 = tpu.iota {dimensions = array<i32: 0>} : vector<16x256xi32>
    %33 = vector.broadcast %31 : vector<1x256xf32> to vector<16x256xf32>
    %34 = arith.cmpf oeq, %29, %33 : vector<16x256xf32>
    %c16_i32 = arith.constant 16 : i32
    %35 = vector.broadcast %c16_i32 : i32 to vector<16x256xi32>
    %36 = arith.select %34, %32, %35 : vector<16x256xi1>, vector<16x256xi32>
    %cst_8 = arith.constant dense<2147483647> : vector<256xi32>
    %37 = vector.multi_reduction <minsi>, %36, %cst_8 [0] : vector<16x256xi32> to vector<256xi32>
    %38 = vector.shape_cast %37 : vector<256xi32> to vector<1x256xi32>
    %39 = vector.broadcast %38 : vector<1x256xi32> to vector<16x256xi32>
    %40 = arith.cmpi eq, %32, %39 : vector<16x256xi32>
    %41 = arith.extui %40 : vector<16x256xi1> to vector<16x256xi32>
    %42 = arith.sitofp %41 : vector<16x256xi32> to vector<16x256xf32>
    %cst_9 = arith.constant dense<0.000000e+00> : vector<4x256xf32>
    %43 = tpu.matmul %2, %42, %cst_9 {dimension_numbers = #tpu.dot_dimension_numbers<[1], [0], [0], [1], [0, 0, 1, 1], [], []>} : vector<4x16xf32>, vector<16x256xf32>, vector<4x256xf32> -> vector<4x256xf32>
    %c0_10 = arith.constant 0 : index
    %c0_11 = arith.constant 0 : index
    %c0_12 = arith.constant 0 : index
    %44 = vector.load %arg6[%c0_10, %c0_11, %c0_12] : memref<1x4x256xf32, #tpu.memory_space<vmem>>, vector<1x4x256xf32>
    %45 = vector.shape_cast %44 : vector<1x4x256xf32> to vector<4x256xf32>
    %46 = vector.shape_cast %43 : vector<4x256xf32> to vector<1x4x256xf32>
    tpu.vector_store %arg6[%c0_10, %c0_11, %c0_12], %46 {strides = array<i32>} : memref<1x4x256xf32, #tpu.memory_space<vmem>>, vector<1x4x256xf32>,
    %c0_13 = arith.constant 0 : index
    %c0_14 = arith.constant 0 : index
    %c0_15 = arith.constant 0 : index
    %47 = vector.load %arg7[%c0_13, %c0_14, %c0_15] : memref<1x1x256xi32, #tpu.memory_space<vmem>>, vector<1x1x256xi32>
    %48 = vector.shape_cast %47 : vector<1x1x256xi32> to vector<1x256xi32>
    %49 = vector.shape_cast %38 : vector<1x256xi32> to vector<1x1x256xi32>
    tpu.vector_store %arg7[%c0_13, %c0_14, %c0_15], %49 {strides = array<i32>} : memref<1x1x256xi32, #tpu.memory_space<vmem>>, vector<1x1x256xi32>,
    %cst_16 = arith.constant 1.000000e+00 : f32
    %50 = vector.broadcast %cst_16 : f32 to vector<256x1xf32>
    %cst_17 = arith.constant dense<0.000000e+00> : vector<16x1xf32>
    %51 = tpu.matmul %42, %50, %cst_17 {dimension_numbers = #tpu.dot_dimension_numbers<[1], [0], [0], [1], [0, 0, 1, 1], [], []>} : vector<16x256xf32>, vector<256x1xf32>, vector<16x1xf32> -> vector<16x1xf32>
    %c0_18 = arith.constant 0 : index
    %c0_19 = arith.constant 0 : index
    %c0_20 = arith.constant 0 : index
    %52 = vector.load %arg8[%c0_18, %c0_19, %c0_20] : memref<1x16x1xf32, #tpu.memory_space<vmem>>, vector<1x16x1xf32>
    %53 = vector.shape_cast %52 : vector<1x16x1xf32> to vector<16x1xf32>
    %54 = vector.shape_cast %51 : vector<16x1xf32> to vector<1x16x1xf32>
    tpu.vector_store %arg8[%c0_18, %c0_19, %c0_20], %54 {strides = array<i32>} : memref<1x16x1xf32, #tpu.memory_space<vmem>>, vector<1x16x1xf32>,
    %55 = arith.subf %43, %1 : vector<4x256xf32>
    %56 = arith.mulf %55, %55 : vector<4x256xf32>
    %cst_21 = arith.constant dense<0.000000e+00> : vector<256xf32>
    %57 = vector.multi_reduction <add>, %56, %cst_21 [0] : vector<4x256xf32> to vector<256xf32>
    %58 = vector.shape_cast %57 : vector<256xf32> to vector<1x256xf32>
    %cst_22 = arith.constant dense<0.000000e+00> : vector<1xf32>
    %59 = vector.multi_reduction <add>, %58, %cst_22 [1] : vector<1x256xf32> to vector<1xf32>
    %60 = vector.shape_cast %59 : vector<1xf32> to vector<1x1xf32>
    %c0_23 = arith.constant 0 : index
    %c0_24 = arith.constant 0 : index
    %c0_25 = arith.constant 0 : index
    %61 = vector.load %arg9[%c0_23, %c0_24, %c0_25] : memref<1x1x1xf32, #tpu.memory_space<vmem>>, vector<1x1x1xf32>
    %62 = vector.shape_cast %61 : vector<1x1x1xf32> to vector<1x1xf32>
    %63 = vector.shape_cast %60 : vector<1x1xf32> to vector<1x1x1xf32>
    tpu.vector_store %arg9[%c0_23, %c0_24, %c0_25], %63 {strides = array<i32>} : memref<1x1x1xf32, #tpu.memory_space<vmem>>, vector<1x1x1xf32>,
    return
  }
  func.func @transform_0(%arg0: i32, %arg1: i32) -> (i32, i32, i32) {
    %c0_i32 = arith.constant 0 : i32
    %c0_i32_0 = arith.constant 0 : i32
    return %arg0, %c0_i32, %arg1 : i32, i32, i32
  }
  func.func @transform_1(%arg0: i32, %arg1: i32) -> (i32, i32) {
    %c0_i32 = arith.constant 0 : i32
    %c0_i32_0 = arith.constant 0 : i32
    %c0_i32_1 = arith.constant 0 : i32
    return %c0_i32, %c0_i32_0 : i32, i32
  }
  func.func @transform_2(%arg0: i32, %arg1: i32) -> (i32, i32) {
    %c0_i32 = arith.constant 0 : i32
    %c0_i32_0 = arith.constant 0 : i32
    %c0_i32_1 = arith.constant 0 : i32
    return %c0_i32, %c0_i32_0 : i32, i32
  }
  func.func @transform_3(%arg0: i32, %arg1: i32) -> (i32, i32) {
    %c0_i32 = arith.constant 0 : i32
    %c0_i32_0 = arith.constant 0 : i32
    %c0_i32_1 = arith.constant 0 : i32
    return %c0_i32, %c0_i32_0 : i32, i32
  }
  func.func @transform_4(%arg0: i32, %arg1: i32) -> (i32, i32, i32) {
    %c0_i32 = arith.constant 0 : i32
    %c0_i32_0 = arith.constant 0 : i32
    return %arg0, %c0_i32, %arg1 : i32, i32, i32
  }
  func.func @transform_5(%arg0: i32, %arg1: i32) -> (i32, i32, i32) {
    %c1_i32 = arith.constant 1 : i32
    %0 = arith.muli %arg0, %c1_i32 : i32
    %1 = arith.addi %0, %arg1 : i32
    %c0_i32 = arith.constant 0 : i32
    %c0_i32_0 = arith.constant 0 : i32
    %c0_i32_1 = arith.constant 0 : i32
    return %1, %c0_i32, %c0_i32_0 : i32, i32, i32
  }
  func.func @transform_6(%arg0: i32, %arg1: i32) -> (i32, i32, i32) {
    %c1_i32 = arith.constant 1 : i32
    %0 = arith.muli %arg0, %c1_i32 : i32
    %1 = arith.addi %0, %arg1 : i32
    %c0_i32 = arith.constant 0 : i32
    %c0_i32_0 = arith.constant 0 : i32
    %c0_i32_1 = arith.constant 0 : i32
    return %1, %c0_i32, %c0_i32_0 : i32, i32, i32
  }
  func.func @transform_7(%arg0: i32, %arg1: i32) -> (i32, i32, i32) {
    %c1_i32 = arith.constant 1 : i32
    %0 = arith.muli %arg0, %c1_i32 : i32
    %1 = arith.addi %0, %arg1 : i32
    %c0_i32 = arith.constant 0 : i32
    %c0_i32_0 = arith.constant 0 : i32
    %c0_i32_1 = arith.constant 0 : i32
    return %1, %c0_i32, %c0_i32_0 : i32, i32, i32
  }
}

</mosaic_0001>

<bundles_post_ra>
// kernel: vector_quantizer_forward.1
= control target key start
LH: loop header
LB: loop body
LE: loop exit
PB: predicated region body
PF: predicated region fallthrough
CT: control target
= control target key end

     0   :  { %s1020_s24 = smov 0   ;;  %s1022_s25 = smov 0   ;;  %s1194_s0 = inlined_call_operand.vmem [shape: f32[2,4,256], index: 0, kind: input, shape index: {}]   ;;  %s1195_s1 = inlined_call_operand.vmem [shape: f32[16,4], index: 1, kind: input, shape index: {}]   ;;  %s1196_s2 = inlined_call_operand.vmem [shape: f32[4,16], index: 2, kind: input, shape index: {}]   ;;  %s1197_s3 = inlined_call_operand.vmem [shape: f32[16,1], index: 3, kind: input, shape index: {}]   ;;  %s1198_s4 = inlined_call_operand.vmem [shape: f32[2,4,256], index: 4, kind: output, shape index: {0}]   ;;  %s1199_s5 = inlined_call_operand.vmem [shape: s32[2,1,256], index: 5, kind: output, shape index: {1}]   ;;  %s1200_s6 = inlined_call_operand.vmem [shape: f32[2,16,1], index: 6, kind: output, shape index: {2}]   ;;  %s1201_s7 = inlined_call_operand.vmem [shape: f32[2,1,1], index: 7, kind: output, shape index: {3}]  }
   0x1   :  { %s1024_s26 = smov 0  }
   0x2 LB: > { %s30_s27 = sadd.s32 1, %s969_s25  ;;  %p855_p0 = scmp.ge.s32.totalorder %s973_s26, 1  ;;  %s973_s26 = sphi %s1024_s26, %s18_s26   ;;  %s969_s25 = sphi %s1022_s25, %s1203_s25   ;;  %s965_s24 = sphi %s1020_s24, %s1202_s24  }
   0x3   : > { %p32_p1 = scmp.ge.s32.totalorder %s30_s27, 2  ;;  %p271_p2 = scmp.lt.s32.totalorder %s973_s26, 3 }
   0x5   : > { %s1205_s27 = smov (%p32_p1, %s30_s27), 0  ;;  %p272_p3 = pnand %p855_p0, %p271_p2 }
   0x6   : > { %p327_p4 = scmp.lt.s32.totalorder (!%p272_p3), %s965_s24, 1 }
   0x7   : > { %275 = sbr.rel (%p272_p3) target bundleno = 455 (0x1c7), region = 36 }
   0xc   : > { %v368_v0 = vld [vmem:[%s1195_s1] sm:$0xff]  ;;  %v975_v2 = vmov 0   ;;  %v976_v3 = vmov 1   ;;  %v369_v4 = vld [vmem:[%s1195_s1 + $0x8] sm:$0xff]  ;;  %v977_v6 = vmov 2   ;;  %v978_v7 = vmov 3  }
   0xd   : > { %v366_v1 = vld [vmem:[%s1197_s3] sm:$0xff]  ;;  %944 = vset.pattern.permute.xlu1 %v975_v2  ;;  %943 = vset.pattern.permute.xlu0 %v975_v2  ;;  %v367_v5 = vld [vmem:[%s1197_s3 + $0x8] sm:$0xff]  ;;  %s1207_s24 = smov (!%p327_p4, %s965_s24), 1  ;;  %v979_v9 = vmov 1.0   ;;  %vm582_vm12 = vcmask 1040384  }
   0xe   : > { %372 = vperm.xlu0 %943, %v368_v0   ;;  %393 = vperm.xlu1 %944, %v366_v1   ;;  %s879_s13 = sshll.u32 %s1207_s24, 3  ;;  %s860_s17 = sshll.u32 %s1207_s24, 1 }
   0xf   : > { %945 = vset.pattern.permute.xlu2 %v976_v3  ;;  %s334_s16 = scalar_lea.vmem %s1194_s0, %s879_s13  ;;  %882 = vmatpush.msra.mxu2 %v979_v9  ;;  %s350_s20 = scalar_lea.vmem %s1199_s5, %s860_s17 }
  0x10   : > { %406 = vperm.xlu2 %945, %v368_v0   ;;  %v1062_v8 = vld [vmem:[%s334_s16] sm:$0xff]  ;;  %898 = vmatpush.msra.mxu3 %v979_v9  ;;  %s344_s29 = scalar_lea.vmem %s1198_s4, %s879_s13  ;;  %s881_s30 = sshll.u32 %s1207_s24, 4 }
  0x11   : > { %638 = vst [vmem:[#allocation1] ss:$2 sm:$0xff] %v1062_v8  ;;  %883 = vmatpush.msra.mxu2 %v979_v9  ;;  %v381_v13 = vperm.slane %v1062_v8, 0  ;;  %v382_v14 = vperm.slane %v1062_v8, 4  ;;  %v413_v18 = vperm.slane %v1062_v8, 1  ;;  %v414_v20 = vperm.slane %v1062_v8, 5  ;;  %s357_s10 = scalar_lea.vmem %s1200_s6, %s881_s30  ;;  %s362_s13 = scalar_lea.vmem %s1201_s7, %s1207_s24 }
  0x12   : > { %899 = vmatpush.msra.mxu3 %v979_v9  ;;  %v435_v21 = vperm.slane %v1062_v8, 2  ;;  %v436_v23 = vperm.slane %v1062_v8, 6  ;;  %v457_v30 = vperm.slane %v1062_v8, 3  ;;  %v458_v35 = vperm.slane %v1062_v8, 7 }
  0x13   : > { %884 = vmatpush.msra.mxu2 %v979_v9  ;;  %v385_v17 = vperm.slane %v381_v13, 0  ;;  %v386_v19 = vperm.slane %v382_v14, 0  ;;  %v417_v25 = vperm.slane %v413_v18, 1  ;;  %v418_v27 = vperm.slane %v414_v20, 1 }
  0x14   : > { %900 = vmatpush.msra.mxu3 %v979_v9  ;;  %v439_v29 = vperm.slane %v435_v21, 2  ;;  %v440_v33 = vperm.slane %v436_v23, 2  ;;  %v461_v43 = vperm.slane %v457_v30, 3  ;;  %v462_v48 = vperm.slane %v458_v35, 3 }
  0x15   : > { %885 = vmatpush.msra.mxu2 %v979_v9  ;;  %v485_v8 = vlaneseq }
  0x16   : > { %377 = vperm.xlu0 %943, %v369_v4   ;;  %398 = vperm.xlu1 %944, %v367_v5  }
  0x17   : > { %901 = vmatpush.msra.mxu3 %v979_v9  ;;  %886 = vmatpush.msra.mxu2 %v979_v9  ;;  %v1105_v14 = vshrl.u32 %v485_v8, 7  ;;  %vm586_vm15 = vcmp.lt.s32.totalorder %v485_v8, 256 }
  0x18   : > { %410 = vperm.xlu2 %945, %v369_v4  }
  0x19   : > { %902 = vmatpush.msra.mxu3 %v979_v9  ;;  %887 = vmatpush.msra.mxu2 %v979_v9 }
  0x1b   : > { %903 = vmatpush.msra.mxu3 %v979_v9  ;;  %888 = vmatpush.msra.mxu2 %v979_v9 }
  0x1d   : > { %904 = vmatpush.msra.mxu3 %v979_v9  ;;  %889 = vmatpush.msra.mxu2 %v979_v9 }
  0x1e   : > { %946 = vset.pattern.permute.xlu0 %v977_v6  ;;  %947 = vset.pattern.permute.xlu1 %v977_v6 }
  0x1f   : > { %428 = vperm.xlu0 %946, %v368_v0   ;;  %432 = vperm.xlu1 %947, %v369_v4  }
  0x20   : > { %948 = vset.pattern.permute.xlu2 %v978_v7  ;;  %905 = vmatpush.msra.mxu3 %v979_v9 }
  0x21   : > { %450 = vperm.xlu2 %948, %v368_v0   ;;  %890 = vmatpush.msra.mxu2 %v979_v9 }
  0x22   : > { %906 = vmatpush.msra.mxu3 %v979_v9 }
  0x23   : > { %891 = vmatpush.msra.mxu2 %v979_v9 }
  0x24   : > { %907 = vmatpush.msra.mxu3 %v979_v9 }
  0x25   : > { %892 = vmatpush.msra.mxu2 %v979_v9 }
  0x26   : > { %908 = vmatpush.msra.mxu3 %v979_v9 }
  0x27   : > { %949 = vset.pattern.permute.xlu1 %v978_v7  ;;  %950 = vset.pattern.permute.xlu0 %v978_v7 }
  0x28   : > { %454 = vperm.xlu1 %949, %v369_v4   ;;  %893 = vmatpush.msra.mxu2 %v979_v9 }
  0x29   : > { %909 = vmatpush.msra.mxu3 %v979_v9 }
  0x2a   : > { %894 = vmatpush.msra.mxu2 %v979_v9 }
  0x2b   : > { %910 = vmatpush.msra.mxu3 %v979_v9 }
  0x2c   : > { %895 = vmatpush.msra.mxu2 %v979_v9 }
  0x2d   : > { %911 = vmatpush.msra.mxu3 %v979_v9 }
  0x2e   : > { %896 = vmatpush.msra.mxu2 %v979_v9 }
  0x2f   : > { %912 = vmatpush.msra.mxu3 %v979_v9 }
  0x30   : > { %897 = vmatpush.msra.mxu2 %v979_v9 }
  0x31   : > { %913 = vmatpush.msra.mxu3 %v979_v9 }
  0x6a   : > { %v407_v12 = vpop.permute.xlu2 %406 }
  0x6b   : > { %v419_v37 = vmul.f32 %v417_v25, %v407_v12  ;;  %v420_v39 = vmul.f32 %v418_v27, %v407_v12 }
  0x72   : > { %v411_v22 = vpop.permute.xlu2 %410 }
  0x73   : > { %v421_v41 = vmul.f32 %v417_v25, %v411_v22  ;;  %v422_v45 = vmul.f32 %v418_v27, %v411_v22 }
  0x7b   : > { %v451_v47 = vpop.permute.xlu2 %450 }
  0x7c   : > { %v463_v55 = vmul.f32 %v461_v43, %v451_v47  ;;  %v464_v58 = vmul.f32 %v462_v48, %v451_v47 }
  0x80   : > { %v373_v10 = vpop.permute.xlu0 %372  ;;  %v394_v11 = vpop.permute.xlu1 %393 }
  0x81   : > { %v387_v24 = vmul.f32 %v385_v17, %v373_v10  ;;  %v388_v26 = vmul.f32 %v386_v19, %v373_v10 }
  0x83   : > { %v401_v36 = vadd.f32 %v394_v11, %v387_v24  ;;  %v402_v38 = vadd.f32 %v394_v11, %v388_v26 }
  0x85   : > { %v423_v49 = vadd.f32 %v419_v37, %v401_v36  ;;  %v424_v51 = vadd.f32 %v420_v39, %v402_v38 }
  0x88   : > { %v378_v15 = vpop.permute.xlu0 %377  ;;  %v399_v16 = vpop.permute.xlu1 %398 }
  0x89   : > { %v389_v28 = vmul.f32 %v385_v17, %v378_v15  ;;  %v390_v31 = vmul.f32 %v386_v19, %v378_v15  ;;  %v487_v19 = vadd.s32 8, %v1105_v14 }
  0x8b   : > { %v403_v40 = vadd.f32 %v399_v16, %v389_v28  ;;  %v404_v44 = vadd.f32 %v399_v16, %v390_v31 }
  0x8d   : > { %v425_v53 = vadd.f32 %v421_v41, %v403_v40  ;;  %v426_v56 = vadd.f32 %v422_v45, %v404_v44  ;;  %v365_v41 = vld [vmem:[%s1196_s2] sm:$0xf]  ;;  %v640_v44 = vld.sshfl [vmem:[#allocation1 + $0x8] sm:$0xff pattern:$0x75316420] }
  0x91   : > { %v429_v32 = vpop.permute.xlu0 %428  ;;  %v433_v34 = vpop.permute.xlu1 %432 }
  0x92   : > { %v441_v42 = vmul.f32 %v439_v29, %v429_v32  ;;  %v442_v46 = vmul.f32 %v440_v33, %v429_v32  ;;  %v443_v50 = vmul.f32 %v439_v29, %v433_v34  ;;  %v444_v52 = vmul.f32 %v440_v33, %v433_v34 }
  0x94   : > { %v445_v54 = vadd.f32 %v441_v42, %v423_v49  ;;  %v446_v57 = vadd.f32 %v442_v46, %v424_v51  ;;  %v447_v59 = vadd.f32 %v443_v50, %v425_v53  ;;  %v448_v61 = vadd.f32 %v444_v52, %v426_v56 }
  0x96   : > { %v467_v0 = vadd.f32 %v463_v55, %v445_v54  ;;  %v468_v1 = vadd.f32 %v464_v58, %v446_v57 }
  0x9a   : > { %v455_v60 = vpop.permute.xlu1 %454 }
  0x9b   : > { %v465_v62 = vmul.f32 %v461_v43, %v455_v60  ;;  %v466_v63 = vmul.f32 %v462_v48, %v455_v60  ;;  %v639_v43 = vld.sshfl [vmem:[#allocation1] sm:$0xff pattern:$0x75316420] }
  0x9d   : > { %v469_v2 = vadd.f32 %v465_v62, %v447_v59  ;;  %v470_v3 = vadd.f32 %v466_v63, %v448_v61 }
  0x9f   : > { %v471_v4 = vmin.f32 %v467_v0, %v469_v2  ;;  %v478_v5 = vmin.f32 %v468_v1, %v470_v3 }
  0xa1   : > { %v472_v6 = vrot.slane %v471_v4, 4  ;;  %v479_v7 = vrot.slane %v478_v5, 4 }
  0xa3   : > { %v473_v10 = vmin.f32 %v471_v4, %v472_v6  ;;  %v480_v11 = vmin.f32 %v478_v5, %v479_v7 }
  0xa5   : > { %v474_v12 = vrot.slane %v473_v10, 2  ;;  %v481_v13 = vrot.slane %v480_v11, 2 }
  0xa7   : > { %v475_v15 = vmin.f32 %v473_v10, %v474_v12  ;;  %v482_v16 = vmin.f32 %v480_v11, %v481_v13 }
  0xa9   : > { %v476_v17 = vrot.slane %v475_v15, 1  ;;  %v483_v18 = vrot.slane %v482_v16, 1 }
  0xab   : > { %v477_v20 = vmin.f32 %v475_v15, %v476_v17  ;;  %v484_v21 = vmin.f32 %v482_v16, %v483_v18 }
  0xad   : > { %vm488_vm0 = vcmp.eq.f32.partialorder %v467_v0, %v477_v20  ;;  %vm489_vm1 = vcmp.eq.f32.partialorder %v468_v1, %v484_v21  ;;  %vm490_vm2 = vcmp.eq.f32.partialorder %v469_v2, %v477_v20  ;;  %vm491_vm3 = vcmp.eq.f32.partialorder %v470_v3, %v484_v21 }
  0xae   : > { %v492_v22 = vsel %vm488_vm0, %v1105_v14, 16  ;;  %v493_v23 = vsel %vm489_vm1, %v1105_v14, 16  ;;  %v494_v24 = vsel %vm490_vm2, %v487_v19, 16  ;;  %v495_v25 = vsel %vm491_vm3, %v487_v19, 16 }
  0xaf   : > { %vm496_vm4 = vcmp.lt.s32.totalorder %v492_v22, %v494_v24  ;;  %vm507_vm5 = vcmp.lt.s32.totalorder %v493_v23, %v495_v25  ;;  %vm530_vm0 = vcmask 130048   ;;  %vm577_vm3 = vcmask 1043456  }
  0xb0   : > { %v497_v26 = vsel %vm496_vm4, %v492_v22, %v494_v24  ;;  %v508_v27 = vsel %vm507_vm5, %v493_v23, %v495_v25  ;;  %vm635_vm4 = vcmask 7168   ;;  %vm664_vm5 = vcmask 0  }
  0xb1   : > { %v498_v28 = vrot.slane %v497_v26, 4  ;;  %v509_v29 = vrot.slane %v508_v27, 4 }
  0xb3   : > { %vm499_vm6 = vcmp.lt.s32.totalorder %v497_v26, %v498_v28  ;;  %vm510_vm7 = vcmp.lt.s32.totalorder %v508_v27, %v509_v29 }
  0xb4   : > { %v500_v30 = vsel %vm499_vm6, %v497_v26, %v498_v28  ;;  %v511_v31 = vsel %vm510_vm7, %v508_v27, %v509_v29 }
  0xb5   : > { %v501_v32 = vrot.slane %v500_v30, 2  ;;  %v512_v33 = vrot.slane %v511_v31, 2 }
  0xb7   : > { %vm502_vm8 = vcmp.lt.s32.totalorder %v500_v30, %v501_v32  ;;  %vm513_vm9 = vcmp.lt.s32.totalorder %v511_v31, %v512_v33 }
  0xb8   : > { %v503_v34 = vsel %vm502_vm8, %v500_v30, %v501_v32  ;;  %v514_v35 = vsel %vm513_vm9, %v511_v31, %v512_v33 }
  0xb9   : > { %v504_v36 = vrot.slane %v503_v34, 1  ;;  %v515_v37 = vrot.slane %v514_v35, 1 }
  0xbb   : > { %vm505_vm10 = vcmp.lt.s32.totalorder %v503_v34, %v504_v36  ;;  %vm516_vm11 = vcmp.lt.s32.totalorder %v514_v35, %v515_v37 }
  0xbc   : > { %v506_v38 = vsel %vm505_vm10, %v503_v34, %v504_v36  ;;  %v517_v39 = vsel %vm516_vm11, %v514_v35, %v515_v37 }
  0xbd   : > { %vm520_vm13 = vcmp.eq.s32.totalorder %v487_v19, %v506_v38  ;;  %vm521_vm14 = vcmp.eq.s32.totalorder %v487_v19, %v517_v39  ;;  %v581_v40 = vrot.slane %v517_v39, 7  ;;  %vm518_vm1 = vcmp.eq.s32.totalorder %v1105_v14, %v506_v38 }
  0xbe   : > { %867 = vmatpush.msk.msra.mxu0 %vm520_vm13, %v979_v9  ;;  %870 = vmatpush.msk.msra.mxu1 %vm521_vm14, %v979_v9  ;;  %vm519_vm2 = vcmp.eq.s32.totalorder %v1105_v14, %v517_v39 }
  0xbf   : > { %v583_v42 = vsel %vm582_vm12, %v506_v38, %v581_v40  ;;  %874 = vmatmul.msk.f32.vlgmr.msra.gmra.mxu2 %vm520_vm13, %v979_v9  ;;  %876 = vmatmul.msk.f32.vlgmr.msra.gmra.mxu3 %vm521_vm14, %v979_v9 }
  0xc0   : > { %588 = vst.msk [vmem:[%s350_s20] sm:$0x3] %vm586_vm15, %v583_v42  ;;  %868 = vmatpush.msk.msra.mxu0 %vm518_vm1, %v979_v9  ;;  %871 = vmatpush.msk.msra.mxu1 %vm519_vm2, %v979_v9 }
  0xc1   : > { %869 = vmatmul.msk.f32.vlgmr.msra.gmra.mxu0 %vm530_vm0, %v365_v41  ;;  %872 = vmatmul.msk.f32.vlgmr.msra.gmra.mxu1 %vm530_vm0, %v365_v41 }
  0xc2   : > { %589 = vmatpush.msrb.mxu0 %v979_v9  ;;  %612 = vmatpush.msrb.mxu1 %v979_v9 }
  0xc4   : > { %590 = vmatpush.msrb.mxu0 %v979_v9  ;;  %613 = vmatpush.msrb.mxu1 %v979_v9 }
  0xc6   : > { %591 = vmatpush.msrb.mxu0 %v979_v9  ;;  %614 = vmatpush.msrb.mxu1 %v979_v9 }
  0xc8   : > { %592 = vmatpush.msrb.mxu0 %v979_v9  ;;  %615 = vmatpush.msrb.mxu1 %v979_v9 }
  0xca   : > { %593 = vmatpush.msrb.mxu0 %v979_v9  ;;  %616 = vmatpush.msrb.mxu1 %v979_v9 }
  0xcc   : > { %594 = vmatpush.msrb.mxu0 %v979_v9  ;;  %617 = vmatpush.msrb.mxu1 %v979_v9 }
  0xce   : > { %595 = vmatpush.msrb.mxu0 %v979_v9  ;;  %618 = vmatpush.msrb.mxu1 %v979_v9 }
  0xd0   : > { %596 = vmatpush.msrb.mxu0 %v979_v9  ;;  %619 = vmatpush.msrb.mxu1 %v979_v9 }
  0xd2   : > { %597 = vmatpush.msrb.mxu0 %v979_v9  ;;  %620 = vmatpush.msrb.mxu1 %v979_v9 }
  0xd4   : > { %598 = vmatpush.msrb.mxu0 %v979_v9  ;;  %621 = vmatpush.msrb.mxu1 %v979_v9 }
  0xd6   : > { %599 = vmatpush.msrb.mxu0 %v979_v9  ;;  %622 = vmatpush.msrb.mxu1 %v979_v9 }
  0xd8   : > { %600 = vmatpush.msrb.mxu0 %v979_v9  ;;  %623 = vmatpush.msrb.mxu1 %v979_v9 }
  0xda   : > { %601 = vmatpush.msrb.mxu0 %v979_v9  ;;  %624 = vmatpush.msrb.mxu1 %v979_v9 }
  0xdc   : > { %602 = vmatpush.msrb.mxu0 %v979_v9  ;;  %625 = vmatpush.msrb.mxu1 %v979_v9 }
  0xde   : > { %603 = vmatpush.msrb.mxu0 %v979_v9  ;;  %626 = vmatpush.msrb.mxu1 %v979_v9 }
  0xe0   : > { %604 = vmatpush.msrb.mxu0 %v979_v9  ;;  %627 = vmatpush.msrb.mxu1 %v979_v9 }
  0xe1   : > { %873 = vmatmul.msk.f32.vlgmr.msrb.gmra.mxu0 %vm518_vm1, %v979_v9  ;;  %875 = vmatmul.msk.f32.vlgmr.msrb.gmra.mxu1 %vm519_vm2, %v979_v9 }
 0x13e   : > { %v551_v45 = vpop.f32.mrf.mxu0  ;;  %v571_v46 = vpop.f32.mrf.mxu1 }
 0x13f   : > { %v643_v47 = vsub.f32 %v551_v45, %v639_v43  ;;  %v576_v48 = vrot.slane %v571_v46, 4  ;;  %v644_v49 = vsub.f32 %v571_v46, %v640_v44 }
 0x141   : > { %v645_v50 = vmul.f32 %v643_v47, %v643_v47  ;;  %v578_v51 = vsel %vm577_vm3, %v551_v45, %v576_v48  ;;  %v646_v52 = vmul.f32 %v644_v49, %v644_v49 }
 0x142   : > { %580 = vst [vmem:[%s344_s29] sm:$0xff] %v578_v51  ;;  %v609_v9 = vpop.f32.mrf.mxu2  ;;  %v632_v53 = vpop.f32.mrf.mxu3 }
 0x143   : > { %v647_v54 = vsel %vm577_vm3, %v645_v50, 0.0  ;;  %v654_v55 = vsel %vm577_vm3, %v646_v52, 0.0  ;;  %v633_v56 = vadd.f32 %v632_v53, %v609_v9 }
 0x144   : > { %v648_v57 = vrot.slane %v647_v54, 4  ;;  %v655_v58 = vrot.slane %v654_v55, 4 }
 0x145   : > { %637 = vst.msk [vmem:[%s357_s10 + $0x8] sm:$0xff] %vm635_vm4, %v633_v56 }
 0x146   : > { %v649_v59 = vadd.f32 %v648_v57, %v647_v54  ;;  %v656_v60 = vadd.f32 %v655_v58, %v654_v55 }
 0x148   : > { %v650_v61 = vrot.slane %v649_v59, 2  ;;  %v657_v62 = vrot.slane %v656_v60, 2 }
 0x14a   : > { %v651_v63 = vadd.f32 %v650_v61, %v649_v59  ;;  %v658_v0 = vadd.f32 %v657_v62, %v656_v60 }
 0x14c   : > { %v652_v1 = vrot.slane %v651_v63, 1  ;;  %v659_v2 = vrot.slane %v658_v0, 1 }
 0x14e   : > { %v653_v3 = vadd.f32 %v652_v1, %v651_v63  ;;  %v660_v4 = vadd.f32 %v659_v2, %v658_v0 }
 0x150   : > { %v661_v5 = vadd.f32 %v660_v4, %v653_v3 }
 0x152   : > { %662 = vadd.xlane.f32.xlu2 %v661_v5 }
 0x15e   : > { %v606_v6 = vpop.f32.mrf.mxu0  ;;  %v629_v7 = vpop.f32.mrf.mxu1 }
 0x15f   : > { %v630_v8 = vadd.f32 %v629_v7, %v606_v6 }
 0x161   : > { %636 = vst.msk [vmem:[%s357_s10] sm:$0xff] %vm635_vm4, %v630_v8 }
 0x1c5   : > { %v663_v10 = vpop.xlane.xlu2 %662 }
 0x1c6   : > { %665 = vst.msk [vmem:[%s362_s13] sm:$0x1] %vm664_vm5, %v663_v10 }
 0x1c7 PF: > { %s18_s26 = sadd.s32 1, %s973_s26   ;;  %s1202_s24 = smov %s969_s25 }
 0x1c8   : > { %p15_p5 = scmp.ge.s32.totalorder %s18_s26, 4   ;;  %s1203_s25 = smov %s1205_s27 }
 0x1ca   :  { %17 = sbr.rel (!%p15_p5) target bundleno = 2 (0x2), region = 102 }

</bundles_post_ra>
